<compile_context>
chip_gen: v7x
topology: tpu7x:2x2x1
jax: 0.10.0
libtpu: 0.0.40
codegen_flags: <defaults>
</compile_context>

<pallas_src>
import math
from functools import partial

import jax
import jax.numpy as jnp
from jax import lax
from jax.experimental import pallas as pl
from jax.experimental.pallas import tpu as pltpu


def _round_up(x, m):
    return ((x + m - 1) // m) * m


def _pick_encoder_tile(B, max_tile=512):
    """Batch tile for the encoder kernel."""
    if B <= 128:
        return B                       # small-B path: full-array blocks, no padding
    b_al = _round_up(B, 128)
    t = min(max_tile, b_al)
    if b_al >= 256:                    # >= 2 grid steps so v7x's 2nd TC gets work
        t = min(t, b_al // 2)
    return max(128, (t // 128) * 128)


def _pick_logits_tile(B, max_tile=1024, out_block_budget=16 * 1024 * 1024):
    """Query-row tile for the logits kernel (output block is (tile, B) f32)."""
    if B <= 128:
        return B
    b_al = _round_up(B, 128)
    t_mem = out_block_budget // (2 * 4 * b_al)   # double-buffered f32 out block
    t = min(max_tile, b_al, max(t_mem, 128))
    if b_al >= 256:                              # keep >= 2 steps for v7x megacore
        t = min(t, b_al // 2)
    return max(128, (t // 128) * 128)


# ---------------------------------------------------------------------------
# Kernel 1: per-modality linear encoders + L2 normalization (dim=1).
# Extra outputs: bf16 ts embedding pre-scaled by exp(temperature) and the
# bf16 text embedding in transposed (D, B) layout for the similarity matmul.
# ---------------------------------------------------------------------------
def _encode_kernel(ts_ref, txt_ref, w_ts_ref, b_ts_ref, w_t_ref, b_t_ref,
                   scale_ref, ts_emb_ref, txt_emb_ref, ts_scaled_ref, txt_t_ref,
                   *, bf16_transpose):
    y_ts = jnp.dot(ts_ref[...].astype(jnp.bfloat16), w_ts_ref[...],
                   preferred_element_type=jnp.float32) + b_ts_ref[...]
    y_txt = jnp.dot(txt_ref[...].astype(jnp.bfloat16), w_t_ref[...],
                    preferred_element_type=jnp.float32) + b_t_ref[...]

    # F.normalize(x, dim=1): x / max(||x||, 1e-12) == x * rsqrt(max(sumsq, 1e-24))
    eps2 = jnp.float32(1e-24)
    ts_emb = y_ts * lax.rsqrt(
        jnp.maximum(jnp.sum(y_ts * y_ts, axis=1, keepdims=True), eps2))
    txt_emb = y_txt * lax.rsqrt(
        jnp.maximum(jnp.sum(y_txt * y_txt, axis=1, keepdims=True), eps2))

    ts_emb_ref[...] = ts_emb
    txt_emb_ref[...] = txt_emb

    # bf16 ts embedding pre-multiplied by exp(temperature): the logits kernel's
    # LHS needs no cast and no scale multiply in its (mem-bound) inner loop.
    ts_scaled_ref[...] = (ts_emb * scale_ref[0, 0]).astype(jnp.bfloat16)

    # Transposed (D, B) bf16 text operand; cast before transpose (half the XLU
    # traffic) when the tile is bf16-packing friendly, else transpose in f32.
    if bf16_transpose:
        txt_t_ref[...] = txt_emb.astype(jnp.bfloat16).T
    else:
        txt_t_ref[...] = txt_emb.T.astype(jnp.bfloat16)


# ---------------------------------------------------------------------------
# Kernel 2: logits = (exp(T) * ts_emb) @ txt_emb.T   (scale already folded in)
# ---------------------------------------------------------------------------
def _logits_kernel(ts_ref, txt_t_ref, out_ref):
    out_ref[...] = jnp.dot(ts_ref[...], txt_t_ref[...],
                           preferred_element_type=jnp.float32)


# ---------------------------------------------------------------------------
# One-time (model-load) parameter preparation.
# ---------------------------------------------------------------------------
def prepare_clip_params(w_ts, b_ts, w_t, b_t, temperature_param):
    """Transposed-to-(in,out), 128-padded, bf16 per-modality weights, f32
    biases, and the pre-exponentiated logit scale. Done once, off the hot path."""
    out_dim, ts_dim = w_ts.shape
    out_dim_t, text_dim = w_t.shape
    assert out_dim == out_dim_t
    d_pad = _round_up(out_dim, 128)

    w_ts_p = jnp.zeros((ts_dim, d_pad), jnp.float32)
    w_ts_p = w_ts_p.at[:, :out_dim].set(jnp.asarray(w_ts, jnp.float32).T)
    w_ts_p = w_ts_p.astype(jnp.bfloat16)

    w_t_p = jnp.zeros((text_dim, d_pad), jnp.float32)
    w_t_p = w_t_p.at[:, :out_dim].set(jnp.asarray(w_t, jnp.float32).T)
    w_t_p = w_t_p.astype(jnp.bfloat16)

    b_ts_p = jnp.zeros((1, d_pad), jnp.float32).at[0, :out_dim].set(
        jnp.asarray(b_ts, jnp.float32))
    b_t_p = jnp.zeros((1, d_pad), jnp.float32).at[0, :out_dim].set(
        jnp.asarray(b_t, jnp.float32))

    scale = jnp.exp(jnp.asarray(temperature_param, jnp.float32)).reshape(1, 1)
    return w_ts_p, b_ts_p, w_t_p, b_t_p, scale, out_dim


# ---------------------------------------------------------------------------
# Forward pass (jitted; no XLA-side copies of the features).
# ---------------------------------------------------------------------------
@partial(jax.jit, static_argnames=("out_dim",))
def clip_forward(ts_features, text_features, w_ts_p, b_ts_p, w_t_p, b_t_p,
                 scale, *, out_dim):
    B, ts_dim = ts_features.shape
    _, text_dim = text_features.shape
    d_pad = w_ts_p.shape[1]

    vmem_limit = 32 * 1024 * 1024

    # ----- encoder kernel -----
    tile_e = _pick_encoder_tile(B)
    n_e = pl.cdiv(B, tile_e)
    bf16_transpose = (tile_e % 16 == 0)

    ts_emb, txt_emb, ts_scaled, txt_t = pl.pallas_call(
        partial(_encode_kernel, bf16_transpose=bf16_transpose),
        out_shape=(
            jax.ShapeDtypeStruct((B, d_pad), jnp.float32),    # ts embeddings
            jax.ShapeDtypeStruct((B, d_pad), jnp.float32),    # text embeddings
            jax.ShapeDtypeStruct((B, d_pad), jnp.bfloat16),   # exp(T)*ts_emb, bf16
            jax.ShapeDtypeStruct((d_pad, B), jnp.bfloat16),   # text emb, (D, B) bf16
        ),
        grid=(n_e,),
        in_specs=[
            pl.BlockSpec((tile_e, ts_dim), lambda i: (i, 0)),     # streamed ts feats
            pl.BlockSpec((tile_e, text_dim), lambda i: (i, 0)),   # streamed text feats
            pl.BlockSpec((ts_dim, d_pad), lambda i: (0, 0)),      # resident weights
            pl.BlockSpec((1, d_pad), lambda i: (0, 0)),
            pl.BlockSpec((text_dim, d_pad), lambda i: (0, 0)),
            pl.BlockSpec((1, d_pad), lambda i: (0, 0)),
            pl.BlockSpec((1, 1), lambda i: (0, 0),
                         memory_space=pltpu.MemorySpace.SMEM),    # exp(temperature)
        ],
        out_specs=(
            pl.BlockSpec((tile_e, d_pad), lambda i: (i, 0)),
            pl.BlockSpec((tile_e, d_pad), lambda i: (i, 0)),
            pl.BlockSpec((tile_e, d_pad), lambda i: (i, 0)),
            pl.BlockSpec((d_pad, tile_e), lambda i: (0, i)),
        ),
        compiler_params=pltpu.CompilerParams(
            dimension_semantics=("parallel",),
            vmem_limit_bytes=vmem_limit,
        ),
    )(ts_features, text_features, w_ts_p, b_ts_p, w_t_p, b_t_p, scale)

    # ----- logits kernel -----
    tile_l = _pick_logits_tile(B)
    n_l = pl.cdiv(B, tile_l)

    logits = pl.pallas_call(
        _logits_kernel,
        out_shape=jax.ShapeDtypeStruct((B, B), jnp.float32),
        grid=(n_l,),
        in_specs=[
            pl.BlockSpec((tile_l, d_pad), lambda i: (i, 0)),  # streamed scaled ts emb
            pl.BlockSpec((d_pad, B), lambda i: (0, 0)),       # txt_t fully resident
        ],
        out_specs=pl.BlockSpec((tile_l, B), lambda i: (i, 0)),  # lane-dense full rows
        compiler_params=pltpu.CompilerParams(
            dimension_semantics=("parallel",),
            vmem_limit_bytes=vmem_limit,
        ),
    )(ts_scaled, txt_t)

    # Strip feature padding (only present when output_dim is not 128-aligned).
    if out_dim != d_pad:
        ts_emb = ts_emb[:, :out_dim]
        txt_emb = txt_emb[:, :out_dim]
    return logits, ts_emb, txt_emb


def _reference(ts_features, text_features, w_ts, b_ts, w_t, b_t, temp):
    y_ts = ts_features @ w_ts.T + b_ts
    y_txt = text_features @ w_t.T + b_t
    ts_emb = y_ts / jnp.maximum(jnp.linalg.norm(y_ts, axis=1, keepdims=True), 1e-12)
    txt_emb = y_txt / jnp.maximum(jnp.linalg.norm(y_txt, axis=1, keepdims=True), 1e-12)
    logits = ts_emb @ txt_emb.T * jnp.exp(temp)
    return logits, ts_emb, txt_emb


if __name__ == "__main__":
    # Small shapes consistent with the module's forward:
    B = 8          # batch
    TS_DIM = 32    # ts_dim
    TEXT_DIM = 48  # text_dim
    OUT_DIM = 128  # output_dim (default)
    TEMPERATURE = 0.01

    key = jax.random.PRNGKey(0)
    k1, k2, k3, k4, k5, k6 = jax.random.split(key, 6)

    ts_features = jax.random.normal(k1, (B, TS_DIM), dtype=jnp.float32)
    text_features = jax.random.normal(k2, (B, TEXT_DIM), dtype=jnp.float32)

    # Deterministic parameter init (PyTorch Linear layout: weight (out, in)).
    w_ts = 0.1 * jax.random.normal(k3, (OUT_DIM, TS_DIM), dtype=jnp.float32)
    b_ts = 0.1 * jax.random.normal(k4, (OUT_DIM,), dtype=jnp.float32)
    w_t = 0.1 * jax.random.normal(k5, (OUT_DIM, TEXT_DIM), dtype=jnp.float32)
    b_t = 0.1 * jax.random.normal(k6, (OUT_DIM,), dtype=jnp.float32)
    temperature_param = jnp.float32(math.log(1.0 / TEMPERATURE))

    # One-time parameter prep (padded/transposed bf16 weights, exp(temperature)).
    w_ts_p, b_ts_p, w_t_p, b_t_p, scale, out_dim = prepare_clip_params(
        w_ts, b_ts, w_t, b_t, temperature_param)

    logits, ts_emb, txt_emb = clip_forward(
        ts_features, text_features, w_ts_p, b_ts_p, w_t_p, b_t_p, scale,
        out_dim=out_dim)
    jax.block_until_ready((logits, ts_emb, txt_emb))

    # Correctness check against a pure-JAX f32 reference (bf16 matmul inputs
    # with f32 accumulation -> relaxed tolerances; logits scale = exp(T) = 100).
    ref_logits, ref_ts, ref_txt = _reference(
        ts_features, text_features, w_ts, b_ts, w_t, b_t, temperature_param)
    assert logits.shape == (B, B)
    assert ts_emb.shape == (B, OUT_DIM) and txt_emb.shape == (B, OUT_DIM)
    assert jnp.allclose(ts_emb, ref_ts, atol=2e-2, rtol=2e-2)
    assert jnp.allclose(txt_emb, ref_txt, atol=2e-2, rtol=2e-2)
    assert jnp.allclose(logits, ref_logits, atol=5e-1, rtol=2e-2)

    print("KERNEL_OK")
</pallas_src>

<mosaic_0001>
module attributes {stable_mosaic.version = 11 : i64} {
  func.func @_logits_kernel(%arg0: i32, %arg1: memref<8x128xbf16, #tpu.memory_space<vmem>>, %arg2: memref<128x8xbf16, #tpu.memory_space<vmem>>, %arg3: memref<8x8xf32, #tpu.memory_space<vmem>>) attributes {dimension_semantics = [#tpu.dimension_semantics<parallel>], iteration_bounds = array<i64: 1>, scalar_prefetch = 0 : i64, scratch_operands = 0 : i64, tpu.core_type = #tpu.core_type<tc>, window_params = [{transform_indices = @transform_0, window_bounds = array<i64: 8, 128>}, {pipeline_mode = #tpu.pipeline_mode<synchronous>, transform_indices = @transform_1, window_bounds = array<i64: 128, 8>}, {transform_indices = @transform_2, window_bounds = array<i64: 8, 8>}]} {
    %c0 = arith.constant 0 : index
    %c0_0 = arith.constant 0 : index
    %0 = vector.load %arg1[%c0, %c0_0] : memref<8x128xbf16, #tpu.memory_space<vmem>>, vector<8x128xbf16>
    %c0_1 = arith.constant 0 : index
    %c0_2 = arith.constant 0 : index
    %1 = vector.load %arg2[%c0_1, %c0_2] : memref<128x8xbf16, #tpu.memory_space<vmem>>, vector<128x8xbf16>
    %cst = arith.constant dense<0.000000e+00> : vector<8x8xf32>
    %2 = tpu.matmul %0, %1, %cst {dimension_numbers = #tpu.dot_dimension_numbers<[1], [0], [0], [1], [0, 0, 1, 1], [], []>} : vector<8x128xbf16>, vector<128x8xbf16>, vector<8x8xf32> -> vector<8x8xf32>
    %c0_3 = arith.constant 0 : index
    %c0_4 = arith.constant 0 : index
    %3 = vector.load %arg3[%c0_3, %c0_4] : memref<8x8xf32, #tpu.memory_space<vmem>>, vector<8x8xf32>
    tpu.vector_store %arg3[%c0_3, %c0_4], %2 {strides = array<i32>} : memref<8x8xf32, #tpu.memory_space<vmem>>, vector<8x8xf32>,
    return
  }
  func.func @transform_0(%arg0: i32) -> (i32, i32) {
    %c0_i32 = arith.constant 0 : i32
    %c0_i32_0 = arith.constant 0 : i32
    return %arg0, %c0_i32 : i32, i32
  }
  func.func @transform_1(%arg0: i32) -> (i32, i32) {
    %c0_i32 = arith.constant 0 : i32
    %c0_i32_0 = arith.constant 0 : i32
    %c0_i32_1 = arith.constant 0 : i32
    return %c0_i32, %c0_i32_0 : i32, i32
  }
  func.func @transform_2(%arg0: i32) -> (i32, i32) {
    %c0_i32 = arith.constant 0 : i32
    %c0_i32_0 = arith.constant 0 : i32
    return %arg0, %c0_i32 : i32, i32
  }
}

module attributes {stable_mosaic.version = 11 : i64} {
  func.func @_encode_kernel(%arg0: i32, %arg1: memref<8x32xf32, #tpu.memory_space<vmem>>, %arg2: memref<8x48xf32, #tpu.memory_space<vmem>>, %arg3: memref<32x128xbf16, #tpu.memory_space<vmem>>, %arg4: memref<1x128xf32, #tpu.memory_space<vmem>>, %arg5: memref<48x128xbf16, #tpu.memory_space<vmem>>, %arg6: memref<1x128xf32, #tpu.memory_space<vmem>>, %arg7: memref<1x1xf32, #tpu.memory_space<smem>>, %arg8: memref<8x128xf32, #tpu.memory_space<vmem>>, %arg9: memref<8x128xf32, #tpu.memory_space<vmem>>, %arg10: memref<8x128xbf16, #tpu.memory_space<vmem>>, %arg11: memref<128x8xbf16, #tpu.memory_space<vmem>>) attributes {dimension_semantics = [#tpu.dimension_semantics<parallel>], iteration_bounds = array<i64: 1>, scalar_prefetch = 0 : i64, scratch_operands = 0 : i64, tpu.core_type = #tpu.core_type<tc>, window_params = [{transform_indices = @transform_0, window_bounds = array<i64: 8, 32>}, {transform_indices = @transform_1, window_bounds = array<i64: 8, 48>}, {pipeline_mode = #tpu.pipeline_mode<synchronous>, transform_indices = @transform_2, window_bounds = array<i64: 32, 128>}, {pipeline_mode = #tpu.pipeline_mode<synchronous>, transform_indices = @transform_3, window_bounds = array<i64: 1, 128>}, {pipeline_mode = #tpu.pipeline_mode<synchronous>, transform_indices = @transform_4, window_bounds = array<i64: 48, 128>}, {pipeline_mode = #tpu.pipeline_mode<synchronous>, transform_indices = @transform_5, window_bounds = array<i64: 1, 128>}, {transform_indices = @transform_6, window_bounds = array<i64: 1, 1>}, {transform_indices = @transform_7, window_bounds = array<i64: 8, 128>}, {transform_indices = @transform_8, window_bounds = array<i64: 8, 128>}, {transform_indices = @transform_9, window_bounds = array<i64: 8, 128>}, {transform_indices = @transform_10, window_bounds = array<i64: 128, 8>}]} {
    %c0 = arith.constant 0 : index
    %c0_0 = arith.constant 0 : index
    %0 = vector.load %arg1[%c0, %c0_0] : memref<8x32xf32, #tpu.memory_space<vmem>>, vector<8x32xf32>
    %1 = arith.truncf %0 : vector<8x32xf32> to vector<8x32xbf16>
    %c0_1 = arith.constant 0 : index
    %c0_2 = arith.constant 0 : index
    %2 = vector.load %arg3[%c0_1, %c0_2] : memref<32x128xbf16, #tpu.memory_space<vmem>>, vector<32x128xbf16>
    %cst = arith.constant dense<0.000000e+00> : vector<8x128xf32>
    %3 = tpu.matmul %1, %2, %cst {dimension_numbers = #tpu.dot_dimension_numbers<[1], [0], [0], [1], [0, 0, 1, 1], [], []>} : vector<8x32xbf16>, vector<32x128xbf16>, vector<8x128xf32> -> vector<8x128xf32>
    %c0_3 = arith.constant 0 : index
    %c0_4 = arith.constant 0 : index
    %4 = vector.load %arg4[%c0_3, %c0_4] : memref<1x128xf32, #tpu.memory_space<vmem>>, vector<1x128xf32>
    %5 = vector.broadcast %4 : vector<1x128xf32> to vector<8x128xf32>
    %6 = arith.addf %3, %5 : vector<8x128xf32>
    %c0_5 = arith.constant 0 : index
    %c0_6 = arith.constant 0 : index
    %7 = vector.load %arg2[%c0_5, %c0_6] : memref<8x48xf32, #tpu.memory_space<vmem>>, vector<8x48xf32>
    %8 = arith.truncf %7 : vector<8x48xf32> to vector<8x48xbf16>
    %c0_7 = arith.constant 0 : index
    %c0_8 = arith.constant 0 : index
    %9 = vector.load %arg5[%c0_7, %c0_8] : memref<48x128xbf16, #tpu.memory_space<vmem>>, vector<48x128xbf16>
    %cst_9 = arith.constant dense<0.000000e+00> : vector<8x128xf32>
    %10 = tpu.matmul %8, %9, %cst_9 {dimension_numbers = #tpu.dot_dimension_numbers<[1], [0], [0], [1], [0, 0, 1, 1], [], []>} : vector<8x48xbf16>, vector<48x128xbf16>, vector<8x128xf32> -> vector<8x128xf32>
    %c0_10 = arith.constant 0 : index
    %c0_11 = arith.constant 0 : index
    %11 = vector.load %arg6[%c0_10, %c0_11] : memref<1x128xf32, #tpu.memory_space<vmem>>, vector<1x128xf32>
    %12 = vector.broadcast %11 : vector<1x128xf32> to vector<8x128xf32>
    %13 = arith.addf %10, %12 : vector<8x128xf32>
    %14 = arith.mulf %6, %6 : vector<8x128xf32>
    %cst_12 = arith.constant dense<0.000000e+00> : vector<8xf32>
    %15 = vector.multi_reduction <add>, %14, %cst_12 [1] : vector<8x128xf32> to vector<8xf32>
    %16 = vector.shape_cast %15 : vector<8xf32> to vector<8x1xf32>
    %cst_13 = arith.constant 1.000000e-24 : f32
    %17 = vector.broadcast %cst_13 : f32 to vector<8x1xf32>
    %18 = arith.maximumf %16, %17 : vector<8x1xf32>
    %19 = math.rsqrt %18 : vector<8x1xf32>
    %20 = vector.broadcast %19 : vector<8x1xf32> to vector<8x128xf32>
    %21 = arith.mulf %6, %20 : vector<8x128xf32>
    %22 = arith.mulf %13, %13 : vector<8x128xf32>
    %cst_14 = arith.constant dense<0.000000e+00> : vector<8xf32>
    %23 = vector.multi_reduction <add>, %22, %cst_14 [1] : vector<8x128xf32> to vector<8xf32>
    %24 = vector.shape_cast %23 : vector<8xf32> to vector<8x1xf32>
    %cst_15 = arith.constant 1.000000e-24 : f32
    %25 = vector.broadcast %cst_15 : f32 to vector<8x1xf32>
    %26 = arith.maximumf %24, %25 : vector<8x1xf32>
    %27 = math.rsqrt %26 : vector<8x1xf32>
    %28 = vector.broadcast %27 : vector<8x1xf32> to vector<8x128xf32>
    %29 = arith.mulf %13, %28 : vector<8x128xf32>
    %c0_16 = arith.constant 0 : index
    %c0_17 = arith.constant 0 : index
    %30 = vector.load %arg8[%c0_16, %c0_17] : memref<8x128xf32, #tpu.memory_space<vmem>>, vector<8x128xf32>
    tpu.vector_store %arg8[%c0_16, %c0_17], %21 {strides = array<i32>} : memref<8x128xf32, #tpu.memory_space<vmem>>, vector<8x128xf32>,
    %c0_18 = arith.constant 0 : index
    %c0_19 = arith.constant 0 : index
    %31 = vector.load %arg9[%c0_18, %c0_19] : memref<8x128xf32, #tpu.memory_space<vmem>>, vector<8x128xf32>
    tpu.vector_store %arg9[%c0_18, %c0_19], %29 {strides = array<i32>} : memref<8x128xf32, #tpu.memory_space<vmem>>, vector<8x128xf32>,
    %c0_20 = arith.constant 0 : index
    %c0_21 = arith.constant 0 : index
    %32 = memref.load %arg7[%c0_20, %c0_21] : memref<1x1xf32, #tpu.memory_space<smem>>
    %33 = vector.broadcast %32 : f32 to vector<8x128xf32>
    %34 = arith.mulf %21, %33 : vector<8x128xf32>
    %35 = arith.truncf %34 : vector<8x128xf32> to vector<8x128xbf16>
    %c0_22 = arith.constant 0 : index
    %c0_23 = arith.constant 0 : index
    %36 = vector.load %arg10[%c0_22, %c0_23] : memref<8x128xbf16, #tpu.memory_space<vmem>>, vector<8x128xbf16>
    tpu.vector_store %arg10[%c0_22, %c0_23], %35 {strides = array<i32>} : memref<8x128xbf16, #tpu.memory_space<vmem>>, vector<8x128xbf16>,
    %37 = tpu.transpose %29, [1, 0] : vector<8x128xf32> -> vector<128x8xf32>
    %38 = arith.truncf %37 : vector<128x8xf32> to vector<128x8xbf16>
    %c0_24 = arith.constant 0 : index
    %c0_25 = arith.constant 0 : index
    %39 = vector.load %arg11[%c0_24, %c0_25] : memref<128x8xbf16, #tpu.memory_space<vmem>>, vector<128x8xbf16>
    tpu.vector_store %arg11[%c0_24, %c0_25], %38 {strides = array<i32>} : memref<128x8xbf16, #tpu.memory_space<vmem>>, vector<128x8xbf16>,
    return
  }
  func.func @transform_0(%arg0: i32) -> (i32, i32) {
    %c0_i32 = arith.constant 0 : i32
    %c0_i32_0 = arith.constant 0 : i32
    return %arg0, %c0_i32 : i32, i32
  }
  func.func @transform_1(%arg0: i32) -> (i32, i32) {
    %c0_i32 = arith.constant 0 : i32
    %c0_i32_0 = arith.constant 0 : i32
    return %arg0, %c0_i32 : i32, i32
  }
  func.func @transform_2(%arg0: i32) -> (i32, i32) {
    %c0_i32 = arith.constant 0 : i32
    %c0_i32_0 = arith.constant 0 : i32
    %c0_i32_1 = arith.constant 0 : i32
    return %c0_i32, %c0_i32_0 : i32, i32
  }
  func.func @transform_3(%arg0: i32) -> (i32, i32) {
    %c0_i32 = arith.constant 0 : i32
    %c0_i32_0 = arith.constant 0 : i32
    %c0_i32_1 = arith.constant 0 : i32
    return %c0_i32, %c0_i32_0 : i32, i32
  }
  func.func @transform_4(%arg0: i32) -> (i32, i32) {
    %c0_i32 = arith.constant 0 : i32
    %c0_i32_0 = arith.constant 0 : i32
    %c0_i32_1 = arith.constant 0 : i32
    return %c0_i32, %c0_i32_0 : i32, i32
  }
  func.func @transform_5(%arg0: i32) -> (i32, i32) {
    %c0_i32 = arith.constant 0 : i32
    %c0_i32_0 = arith.constant 0 : i32
    %c0_i32_1 = arith.constant 0 : i32
    return %c0_i32, %c0_i32_0 : i32, i32
  }
  func.func @transform_6(%arg0: i32) -> (i32, i32) {
    %c0_i32 = arith.constant 0 : i32
    %c0_i32_0 = arith.constant 0 : i32
    %c0_i32_1 = arith.constant 0 : i32
    return %c0_i32, %c0_i32_0 : i32, i32
  }
  func.func @transform_7(%arg0: i32) -> (i32, i32) {
    %c0_i32 = arith.constant 0 : i32
    %c0_i32_0 = arith.constant 0 : i32
    return %arg0, %c0_i32 : i32, i32
  }
  func.func @transform_8(%arg0: i32) -> (i32, i32) {
    %c0_i32 = arith.constant 0 : i32
    %c0_i32_0 = arith.constant 0 : i32
    return %arg0, %c0_i32 : i32, i32
  }
  func.func @transform_9(%arg0: i32) -> (i32, i32) {
    %c0_i32 = arith.constant 0 : i32
    %c0_i32_0 = arith.constant 0 : i32
    return %arg0, %c0_i32 : i32, i32
  }
  func.func @transform_10(%arg0: i32) -> (i32, i32) {
    %c0_i32 = arith.constant 0 : i32
    %c0_i32_0 = arith.constant 0 : i32
    return %c0_i32, %arg0 : i32, i32
  }
}

</mosaic_0001>

<bundles_post_ra>
// kernel: clip_forward.3
= control target key start
LH: loop header
LB: loop body
LE: loop exit
PB: predicated region body
PF: predicated region fallthrough
CT: control target
= control target key end

     0   :  { %v206_v1 = vmov 0.0   ;;  %vm207_vm0 = vmmov 0   ;;  %s263_s0 = inlined_call_operand.vmem [shape: bf16[8,128], index: 0, kind: input, shape index: {}]   ;;  %s264_s1 = inlined_call_operand.vmem [shape: bf16[128,8], index: 1, kind: input, shape index: {}]   ;;  %s265_s2 = inlined_call_operand.hbm [shape: f32[8,8], index: 2, kind: output, shape index: {}]  }
   0x1   :  { %v174_v0 = vld [vmem:[%s264_s1] sm:$0xff]   ;;  %151 = vmatprep.subr.bf16.mxu0 %v206_v1  ;;  %v175_v2 = vld [vmem:[%s264_s1 + $0x8] sm:$0xff]   ;;  %167 = vmatprep.mubr.msk.bf16.mxu0 %vm207_vm0, %v206_v1  ;;  %v176_v3 = vld [vmem:[%s264_s1 + $0x10] sm:$0xff]  }
   0x2   :  { %152 = vmatpush3.bf16.msra.mxu0 %v174_v0 }
   0x3   :  { %153 = vmatprep.subr.bf16.mxu0 %v206_v1 }
   0x6   :  { %154 = vmatpush3.bf16.msra.mxu0 %v175_v2 }
   0x7   :  { %155 = vmatprep.subr.bf16.mxu0 %v206_v1 }
   0x8   :  { %7 = vsyncpa [#allocation3], 0  ;;  %v177_v4 = vld [vmem:[%s264_s1 + $0x18] sm:$0xff]   ;;  %v178_v5 = vld [vmem:[%s264_s1 + $0x20] sm:$0xff]   ;;  %s208_s27 = smov [#allocation2]   ;;  %vm118_vm1 = vcmask 64512  }
   0x9   :  { %v179_v6 = vld [vmem:[%s264_s1 + $0x28] sm:$0xff]   ;;  %v180_v7 = vld [vmem:[%s264_s1 + $0x30] sm:$0xff]   ;;  %v181_v8 = vld [vmem:[%s264_s1 + $0x38] sm:$0xff]   ;;  %s126_s28 = sshll.u32 %s208_s27, 4  ;;  %s127_s28 = int_to_ptr.vmem [resolvable:$true] %s126_s28 }
   0xa   :  { %156 = vmatpush3.bf16.msra.mxu0 %v176_v3  ;;  %v13_v9 = vld [vmem:[%s263_s0] sm:$0xf]  ;;  %s182_s29 = scalar_lea.vmem %s127_s28, 128  ;;  %p187_p1 = scmp.lt.s32.totalorder %s127_s28, %s127_s28 }
   0xb   :  { %157 = vmatprep.subr.bf16.mxu0 %v206_v1  ;;  %p183_p0 = scmp.ne.s32.totalorder %s127_s28, %s182_s29  ;;  %p188_p2 = scmp.lt.s32.totalorder %s182_s29, %s182_s29 }
   0xd   :  { %p189_p3 = por %p188_p2, %p187_p1 }
   0xe   :  { %158 = vmatpush3.bf16.msra.mxu0 %v177_v4 }
   0xf   :  { %159 = vmatprep.subr.bf16.mxu0 %v206_v1  ;;  %p190_p4 = pnand %p189_p3, %p183_p0 }
  0x12   :  { %160 = vmatpush3.bf16.msra.mxu0 %v178_v5 }
  0x13   :  { %161 = vmatprep.subr.bf16.mxu0 %v206_v1 }
  0x16   :  { %162 = vmatpush3.bf16.msra.mxu0 %v179_v6 }
  0x17   :  { %163 = vmatprep.subr.bf16.mxu0 %v206_v1 }
  0x1a   :  { %164 = vmatpush3.bf16.msra.mxu0 %v180_v7 }
  0x1b   :  { %165 = vmatprep.subr.bf16.mxu0 %v206_v1 }
  0x1e   :  { %166 = vmatpush3.bf16.msra.mxu0 %v181_v8 }
  0x21   :  { %168 = vmatmul.mubr.bf16.vlgmr.msra.gmra.mrb[0].mxu0 %v13_v9 }
  0xf4   :  { %v112_v10 = vpop.f32.mrb[0].mxu0 }
  0xf5   :  { %119 = vst.msk [vmem:[#allocation2] sm:$0xff] %vm118_vm1, %v112_v10  ;;  %v169_v11 = vpop.f32.mrb[1].mxu0 }
  0xf6   :  { %v115_v12 = vpop.f32.mrb[2].mxu0 }
  0xf7   :  { %193 = shalt.err (!%p190_p4)
}
  0xf8   :  { %s194_s0 = scalar_lea.hbm %s265_s2, 128 }
  0xf9   :  { %p195_p5 = scmp.ne.s32.totalorder %s265_s2, %s194_s0  ;;  %p198_p6 = scmp.lt.u32.totalorder %s194_s0, %s265_s2 }
  0xfb   :  { %p200_p7 = pnand %p198_p6, %p195_p5 }
  0xfd   :  { %203 = shalt.err (!%p200_p7)
}
  0xfe   :  { %129 = dma.vmem_to_hbm [thread:$0]  %s127_s28, 128, %s265_s2, [#allocation3]   ;;  %v170_v13 = vpop.f32.mrb[3].mxu0 }
  0xff   :  { %204 = dma.done.wait [#allocation3], 128  }
 0x100   :  { %205 = vsyncadd [#allocation3], 4294967168 }
 0x101   :  { %133 = vsyncpa [#allocation3], 1 }

// kernel: clip_forward.2
= control target key start
LH: loop header
LB: loop body
LE: loop exit
PB: predicated region body
PF: predicated region fallthrough
CT: control target
= control target key end

     0   :  { %17 = vsyncpa [#allocation4], 0  ;;  %s842_s0 = inlined_call_operand.hbm [shape: f32[8,32], index: 0, kind: input, shape index: {}]   ;;  %s843_s1 = inlined_call_operand.hbm [shape: f32[8,48], index: 1, kind: input, shape index: {}]   ;;  %s844_s2 = inlined_call_operand.hbm [shape: bf16[32,128], index: 2, kind: input, shape index: {}]   ;;  %s845_s3 = inlined_call_operand.vmem [shape: f32[1,128], index: 3, kind: input, shape index: {}]   ;;  %s846_s4 = inlined_call_operand.hbm [shape: bf16[48,128], index: 4, kind: input, shape index: {}]   ;;  %s847_s5 = inlined_call_operand.vmem [shape: f32[1,128], index: 5, kind: input, shape index: {}]   ;;  %s848_s6 = inlined_call_operand.<no memory space> [shape: f32[1,1], index: 6, kind: input, shape index: {}]   ;;  %s849_s7 = inlined_call_operand.hbm [shape: f32[8,128], index: 7, kind: output, shape index: {0}]   ;;  %s850_s8 = inlined_call_operand.hbm [shape: f32[8,128], index: 8, kind: output, shape index: {1}]   ;;  %s851_s9 = inlined_call_operand.vmem [shape: bf16[8,128], index: 9, kind: output, shape index: {2}]   ;;  %s852_s10 = inlined_call_operand.vmem [shape: bf16[128,8], index: 10, kind: output, shape index: {3}]  }
   0x1   :  { %18 = vsyncpa [#allocation7], 0 }
   0x2   :  { %19 = vsyncpa [#allocation10], 0 }
   0x3   :  { %20 = vsyncpa [#allocation5], 0 }
   0x4   :  { %21 = vsyncpa [#allocation13], 0  ;;  %s629_s13 = smov [#allocation6]   ;;  %s630_s15 = smov [#allocation3]  }
   0x5   :  { %s38_s14 = sshll.u32 %s629_s13, 4  ;;  %s28_s16 = sshll.u32 %s630_s15, 4  ;;  %s39_s14 = int_to_ptr.vmem [resolvable:$true] %s38_s14  ;;  %s29_s16 = int_to_ptr.vmem [resolvable:$true] %s28_s16 }
   0x6   :  { %s487_s19 = scalar_lea.hbm %s843_s1, 128 }
   0x7   :  { %p488_p0 = scmp.ne.s32.totalorder %s843_s1, %s487_s19  ;;  %p491_p1 = scmp.lt.u32.totalorder %s487_s19, %s843_s1 }
   0x9   :  { %p493_p2 = pnand %p491_p1, %p488_p0 }
   0xb   :  { %496 = shalt.err (!%p493_p2)
}
   0xc   :  { %s497_s24 = scalar_lea.vmem %s39_s14, 128  ;;  %p502_p4 = scmp.lt.s32.totalorder %s39_s14, %s39_s14 }
   0xd   :  { %p498_p3 = scmp.ne.s32.totalorder %s39_s14, %s497_s24  ;;  %p503_p5 = scmp.lt.s32.totalorder %s497_s24, %s497_s24 }
   0xf   :  { %p504_p6 = por %p503_p5, %p502_p4 }
  0x11   :  { %p505_p7 = pnand %p504_p6, %p498_p3 }
  0x13   :  { %508 = shalt.err (!%p505_p7)
}
  0x14   :  { %41 = dma.hbm_to_vmem [thread:$0]  %s843_s1, 128, %s39_s14, [#allocation7]  }
  0x15   :  { %s509_s29 = scalar_lea.hbm %s842_s0, 128 }
  0x16   :  { %p510_p8 = scmp.ne.s32.totalorder %s842_s0, %s509_s29  ;;  %p513_p9 = scmp.lt.u32.totalorder %s509_s29, %s842_s0 }
  0x18   :  { %p515_p10 = pnand %p513_p9, %p510_p8 }
  0x1a   :  { %518 = shalt.err (!%p515_p10)
}
  0x1b   :  { %s519_s15 = scalar_lea.vmem %s29_s16, 128  ;;  %p524_p12 = scmp.lt.s32.totalorder %s29_s16, %s29_s16 }
  0x1c   :  { %p520_p11 = scmp.ne.s32.totalorder %s29_s16, %s519_s15  ;;  %p525_p13 = scmp.lt.s32.totalorder %s519_s15, %s519_s15 }
  0x1e   :  { %p526_p0 = por %p525_p13, %p524_p12 }
  0x20   :  { %p527_p1 = pnand %p526_p0, %p520_p11 }
  0x22   :  { %530 = shalt.err (!%p527_p1)
}
  0x23   :  { %31 = dma.hbm_to_vmem [thread:$0]  %s842_s0, 128, %s29_s16, [#allocation4]  }
  0x24   :  { %s631_s17 = smov [#allocation8]   ;;  %s531_s21 = scalar_lea.hbm %s844_s2, 256 }
  0x25   :  { %s47_s18 = sshll.u32 %s631_s17, 4  ;;  %p532_p2 = scmp.ne.s32.totalorder %s844_s2, %s531_s21  ;;  %s48_s18 = int_to_ptr.vmem [resolvable:$true] %s47_s18 }
  0x26   :  { %p535_p3 = scmp.lt.u32.totalorder %s531_s21, %s844_s2 }
  0x28   :  { %p537_p4 = pnand %p535_p3, %p532_p2 }
  0x2a   :  { %540 = shalt.err (!%p537_p4)
}
  0x2b   :  { %s541_s26 = scalar_lea.vmem %s48_s18, 256  ;;  %p546_p6 = scmp.lt.s32.totalorder %s48_s18, %s48_s18 }
  0x2c   :  { %p542_p5 = scmp.ne.s32.totalorder %s48_s18, %s541_s26  ;;  %p547_p7 = scmp.lt.s32.totalorder %s541_s26, %s541_s26 }
  0x2e   :  { %p548_p8 = por %p547_p7, %p546_p6 }
  0x30   :  { %p549_p9 = pnand %p548_p8, %p542_p5 }
  0x32   :  { %552 = shalt.err (!%p549_p9)
}
  0x33   :  { %s632_s0 = smov 64   ;;  %s633_s16 = smov 4  }
  0x34   :  { %53 = dma.hbm_to_vmem [thread:$0]  %s844_s2, 256, %s48_s18, [#allocation7], %s632_s0, %s632_s0, %s633_s16  }
  0x35   :  { %s634_s29 = smov [#allocation9]   ;;  %s553_s13 = scalar_lea.hbm %s846_s4, 384 }
  0x36   :  { %s61_s30 = sshll.u32 %s634_s29, 4  ;;  %p554_p10 = scmp.ne.s32.totalorder %s846_s4, %s553_s13  ;;  %s62_s30 = int_to_ptr.vmem [resolvable:$true] %s61_s30 }
  0x37   :  { %p557_p11 = scmp.lt.u32.totalorder %s553_s13, %s846_s4 }
  0x39   :  { %p559_p12 = pnand %p557_p11, %p554_p10 }
  0x3b   :  { %562 = shalt.err (!%p559_p12)
}
  0x3c   :  { %s563_s19 = scalar_lea.vmem %s62_s30, 384  ;;  %p568_p0 = scmp.lt.s32.totalorder %s62_s30, %s62_s30 }
  0x3d   :  { %p564_p13 = scmp.ne.s32.totalorder %s62_s30, %s563_s19  ;;  %p569_p1 = scmp.lt.s32.totalorder %s563_s19, %s563_s19 }
  0x3f   :  { %p570_p2 = por %p569_p1, %p568_p0 }
  0x41   :  { %p571_p3 = pnand %p570_p2, %p564_p13 }
  0x43   :  { %574 = shalt.err (!%p571_p3)
}
  0x44   :  { %67 = dma.hbm_to_vmem [thread:$0]  %s846_s4, 384, %s62_s30, [#allocation10], %s632_s0, %s632_s0, %s633_s16  }
  0x45   :  { %619 = dma.done.wait [#allocation4], 128  }
  0x46   :  { %620 = vsyncadd [#allocation4], 4294967168 }
  0x47   :  { %621 = dma.done.wait [#allocation7], 384  }
  0x48   :  { %622 = vsyncadd [#allocation7], 4294966912 }
  0x49   :  { %623 = dma.done.wait [#allocation10], 384  }
  0x4a   :  { %624 = vsyncadd [#allocation10], 4294966912  ;;  %v635_v0 = vmov 0.0   ;;  %vm636_vm0 = vmmov 0   ;;  %v478_v1 = vld [vmem:[#allocation9] sm:$0xff]   ;;  %v479_v2 = vld [vmem:[#allocation9 + $0x8] sm:$0xff]   ;;  %v246_v31 = vstv %s848_s6 }
  0x4b   :  { %458 = vmatprep.subr.bf16.mxu1 %v635_v0  ;;  %464 = vmatprep.mubr.msk.bf16.mxu1 %vm636_vm0, %v635_v0  ;;  %v481_v3 = vld [vmem:[#allocation8] sm:$0xff]   ;;  %v154_v5 = vld [vmem:[#allocation6] sm:$0xff]  ;;  %v482_v6 = vld [vmem:[#allocation8 + $0x8] sm:$0xff]   ;;  %vm187_vm1 = vcmask 392192   ;;  %vm110_vm2 = vcmask 261120   ;;  %s637_s25 = smov [#allocation11]  }
  0x4c   :  { %450 = vmatprep.subr.bf16.mxu0 %v635_v0  ;;  %454 = vmatprep.mubr.msk.bf16.mxu0 %vm636_vm0, %v635_v0  ;;  %v480_v4 = vld [vmem:[#allocation9 + $0x10] sm:$0xff]   ;;  %v85_v7 = vld [vmem:[#allocation3] sm:$0xff]  ;;  %v155_v8 = vpack.c.bf16 %v154_v5, %v154_v5  ;;  %s369_s26 = sshll.u32 %s637_s25, 4  ;;  %s638_s0 = smov [#allocation12]   ;;  %s370_s26 = int_to_ptr.vmem [resolvable:$true] %s369_s26 }
  0x4d   :  { %459 = vmatpush3.bf16.msra.mxu1 %v478_v1  ;;  %451 = vmatpush3.bf16.msra.mxu0 %v481_v3  ;;  %v86_v9 = vpack.c.bf16 %v85_v7, %v85_v7  ;;  %v406_v10 = vld [vmem:[%s847_s5] ss:$0 sm:$0xff]  ;;  %s379_s16 = sshll.u32 %s638_s0, 4  ;;  %s575_s27 = scalar_lea.vmem %s370_s26, 128  ;;  %s380_s16 = int_to_ptr.vmem [resolvable:$true] %s379_s16 }
  0x4e   :  { %460 = vmatprep.subr.bf16.mxu1 %v635_v0  ;;  %452 = vmatprep.subr.bf16.mxu0 %v635_v0  ;;  %v402_v11 = vld [vmem:[%s845_s3] ss:$0 sm:$0xff]  ;;  %p576_p4 = scmp.ne.s32.totalorder %s370_s26, %s575_s27  ;;  %p580_p5 = scmp.lt.s32.totalorder %s370_s26, %s370_s26 }
  0x4f   :  { %p581_p6 = scmp.lt.s32.totalorder %s575_s27, %s575_s27 }
  0x51   :  { %461 = vmatpush3.bf16.msra.mxu1 %v479_v2  ;;  %453 = vmatpush3.bf16.msra.mxu0 %v482_v6  ;;  %p582_p7 = por %p581_p6, %p580_p5 }
  0x52   :  { %462 = vmatprep.subr.bf16.mxu1 %v635_v0 }
  0x53   :  { %p583_p8 = pnand %p582_p7, %p576_p4 }
  0x54   :  { %455 = vmatmul.mubr.msk.bf16.vlgmr.msra.gmra.mrb[0].mxu0 %vm110_vm2, %v86_v9 }
  0x55   :  { %463 = vmatpush3.bf16.msra.mxu1 %v480_v4 }
  0x58   :  { %465 = vmatmul.mubr.msk.bf16.vlgmr.msra.gmra.mrb[0].mxu1 %vm187_vm1, %v155_v8 }
 0x127   :  { %v148_v13 = vpop.f32.mrb[0].mxu0 }
 0x128   :  { %v149_v16 = vadd.f32 %v402_v11, %v148_v13  ;;  %v456_v17 = vpop.f32.mrb[1].mxu0 }
 0x129   :  { %v151_v19 = vpop.f32.mrb[2].mxu0 }
 0x12a   :  { %v457_v22 = vpop.f32.mrb[3].mxu0  ;;  %v231_v23 = vmul.f32 %v149_v16, %v149_v16 }
 0x12b   :  { %v225_v12 = vpop.f32.mrb[0].mxu1 }
 0x12c   :  { %v226_v14 = vadd.f32 %v406_v10, %v225_v12  ;;  %v466_v15 = vpop.f32.mrb[1].mxu1 }
 0x12d   :  { %v228_v18 = vpop.f32.mrb[2].mxu1 }
 0x12e   :  { %v467_v20 = vpop.f32.mrb[3].mxu1  ;;  %v237_v21 = vmul.f32 %v226_v14, %v226_v14 }
 0x130   :  { %238 = vadd.xlane.f32.xlu0 %v237_v21 }
 0x134   :  { %232 = vadd.xlane.f32.xlu0 %v231_v23 }
 0x1bd   :  { %v239_v24 = vpop.xlane.xlu0 %238 }
 0x1be   :  { %v240_v25 = vmax.f32 %v239_v24, 1e-24 }
 0x1c0   :  { %483 = vrsqrt.f32 %v240_v25 }
 0x1c1   :  { %v233_v26 = vpop.xlane.xlu0 %232 }
 0x1c2   :  { %v234_v27 = vmax.f32 %v233_v26, 1e-24 }
 0x1c4   :  { %485 = vrsqrt.f32 %v234_v27 }
 0x1ca   :  { %v484_v28 = vpop.eup %483 }
 0x1cb   :  { %v242_v29 = vmul.f32 %v484_v28, %v226_v14 }
 0x1cd   :  { %250 = vxpose.xlu1.b32.start.end [1/1] (short) %v242_v29, 128  ;;  %244 = vst [vmem:[#allocation12] sm:$0xff] %v242_v29 }
 0x1ce   :  { %v486_v30 = vpop.eup %485 }
 0x1cf   :  { %v236_v32 = vmul.f32 %v486_v30, %v149_v16 }
 0x1d1   :  { %243 = vst [vmem:[#allocation11] sm:$0xff] %v236_v32  ;;  %v247_v33 = vmul.f32 %v246_v31, %v236_v32 }
 0x1d3   :  { %v248_v34 = vpack.c.bf16 %v247_v33, %v247_v33 }
 0x1d5   :  { %249 = vst [vmem:[%s851_s9] sm:$0xf] %v248_v34 }
 0x1d6   :  { %586 = shalt.err (!%p583_p8)
}
 0x1d7   :  { %s587_s29 = scalar_lea.hbm %s849_s7, 128 }
 0x1d8   :  { %p588_p9 = scmp.ne.s32.totalorder %s849_s7, %s587_s29  ;;  %p591_p10 = scmp.lt.u32.totalorder %s587_s29, %s849_s7 }
 0x1da   :  { %p593_p11 = pnand %p591_p10, %p588_p9 }
 0x1dc   :  { %596 = shalt.err (!%p593_p11)
}
 0x1dd   :  { %372 = dma.vmem_to_hbm [thread:$0]  %s370_s26, 128, %s849_s7, [#allocation5]  }
 0x1de   :  { %s597_s1 = scalar_lea.vmem %s380_s16, 128  ;;  %p602_p13 = scmp.lt.s32.totalorder %s380_s16, %s380_s16 }
 0x1df   :  { %p598_p12 = scmp.ne.s32.totalorder %s380_s16, %s597_s1  ;;  %p603_p0 = scmp.lt.s32.totalorder %s597_s1, %s597_s1 }
 0x1e1   :  { %p604_p1 = por %p603_p0, %p602_p13 }
 0x1e3   :  { %p605_p2 = pnand %p604_p1, %p598_p12 }
 0x1e5   :  { %608 = shalt.err (!%p605_p2)
}
 0x1e6   :  { %s609_s19 = scalar_lea.hbm %s850_s8, 128 }
 0x1e7   :  { %p610_p3 = scmp.ne.s32.totalorder %s850_s8, %s609_s19  ;;  %p613_p4 = scmp.lt.u32.totalorder %s609_s19, %s850_s8 }
 0x1e9   :  { %p615_p5 = pnand %p613_p4, %p610_p3 }
 0x1eb   :  { %618 = shalt.err (!%p615_p5)
}
 0x1ec   :  { %382 = dma.vmem_to_hbm [thread:$0]  %s380_s16, 128, %s850_s8, [#allocation13]   ;;  %vm346_vm3 = vcmask 60416  }
 0x24d   :  { %v266_v35 = vpop.trf.xlu1 }
 0x24e   :  { %v427_v36 = vpack.c.bf16 %v266_v35, %v266_v35 }
 0x250   :  { %347 = vst.msk [vmem:[%s852_s10] sm:$0xf] %vm346_vm3, %v427_v36 }
 0x251   :  { %v267_v37 = vpop.trf.xlu1 }
 0x252   :  { %v428_v38 = vpack.c.bf16 %v267_v37, %v267_v37 }
 0x254   :  { %348 = vst.msk [vmem:[%s852_s10 + $0x4] sm:$0xf] %vm346_vm3, %v428_v38 }
 0x255   :  { %v268_v39 = vpop.trf.xlu1 }
 0x256   :  { %v429_v40 = vpack.c.bf16 %v268_v39, %v268_v39 }
 0x258   :  { %349 = vst.msk [vmem:[%s852_s10 + $0x8] sm:$0xf] %vm346_vm3, %v429_v40 }
 0x259   :  { %v269_v41 = vpop.trf.xlu1 }
 0x25a   :  { %v430_v42 = vpack.c.bf16 %v269_v41, %v269_v41 }
 0x25c   :  { %350 = vst.msk [vmem:[%s852_s10 + $0xc] sm:$0xf] %vm346_vm3, %v430_v42 }
 0x25d   :  { %v270_v43 = vpop.trf.xlu1 }
 0x25e   :  { %v431_v44 = vpack.c.bf16 %v270_v43, %v270_v43 }
 0x260   :  { %351 = vst.msk [vmem:[%s852_s10 + $0x10] sm:$0xf] %vm346_vm3, %v431_v44 }
 0x261   :  { %v271_v45 = vpop.trf.xlu1 }
 0x262   :  { %v432_v46 = vpack.c.bf16 %v271_v45, %v271_v45 }
 0x264   :  { %352 = vst.msk [vmem:[%s852_s10 + $0x14] sm:$0xf] %vm346_vm3, %v432_v46 }
 0x265   :  { %v272_v47 = vpop.trf.xlu1 }
 0x266   :  { %v433_v48 = vpack.c.bf16 %v272_v47, %v272_v47 }
 0x268   :  { %353 = vst.msk [vmem:[%s852_s10 + $0x18] sm:$0xf] %vm346_vm3, %v433_v48 }
 0x269   :  { %v273_v49 = vpop.trf.xlu1 }
 0x26a   :  { %v434_v50 = vpack.c.bf16 %v273_v49, %v273_v49 }
 0x26c   :  { %354 = vst.msk [vmem:[%s852_s10 + $0x1c] sm:$0xf] %vm346_vm3, %v434_v50 }
 0x26d   :  { %v274_v51 = vpop.trf.xlu1 }
 0x26e   :  { %v435_v52 = vpack.c.bf16 %v274_v51, %v274_v51 }
 0x270   :  { %355 = vst.msk [vmem:[%s852_s10 + $0x20] sm:$0xf] %vm346_vm3, %v435_v52 }
 0x271   :  { %v275_v53 = vpop.trf.xlu1 }
 0x272   :  { %v436_v54 = vpack.c.bf16 %v275_v53, %v275_v53 }
 0x274   :  { %356 = vst.msk [vmem:[%s852_s10 + $0x24] sm:$0xf] %vm346_vm3, %v436_v54 }
 0x275   :  { %v276_v55 = vpop.trf.xlu1 }
 0x276   :  { %v437_v56 = vpack.c.bf16 %v276_v55, %v276_v55 }
 0x278   :  { %357 = vst.msk [vmem:[%s852_s10 + $0x28] sm:$0xf] %vm346_vm3, %v437_v56 }
 0x279   :  { %v277_v57 = vpop.trf.xlu1 }
 0x27a   :  { %v438_v58 = vpack.c.bf16 %v277_v57, %v277_v57 }
 0x27c   :  { %358 = vst.msk [vmem:[%s852_s10 + $0x2c] sm:$0xf] %vm346_vm3, %v438_v58 }
 0x27d   :  { %v278_v59 = vpop.trf.xlu1 }
 0x27e   :  { %v439_v60 = vpack.c.bf16 %v278_v59, %v278_v59 }
 0x280   :  { %359 = vst.msk [vmem:[%s852_s10 + $0x30] sm:$0xf] %vm346_vm3, %v439_v60 }
 0x281   :  { %v279_v61 = vpop.trf.xlu1 }
 0x282   :  { %v440_v62 = vpack.c.bf16 %v279_v61, %v279_v61 }
 0x284   :  { %360 = vst.msk [vmem:[%s852_s10 + $0x34] sm:$0xf] %vm346_vm3, %v440_v62 }
 0x285   :  { %v280_v63 = vpop.trf.xlu1 }
 0x286   :  { %v441_v0 = vpack.c.bf16 %v280_v63, %v280_v63 }
 0x288   :  { %361 = vst.msk [vmem:[%s852_s10 + $0x38] sm:$0xf] %vm346_vm3, %v441_v0 }
 0x289   :  { %v281_v1 = vpop.trf.xlu1 }
 0x28a   :  { %v442_v2 = vpack.c.bf16 %v281_v1, %v281_v1 }
 0x28c   :  { %362 = vst.msk [vmem:[%s852_s10 + $0x3c] sm:$0xf] %vm346_vm3, %v442_v2 }
 0x28d   :  { %625 = dma.done.wait [#allocation5], 128  }
 0x28e   :  { %626 = vsyncadd [#allocation5], 4294967168 }
 0x28f   :  { %627 = dma.done.wait [#allocation13], 128  }
 0x290   :  { %628 = vsyncadd [#allocation13], 4294967168 }
 0x291   :  { %397 = vsyncpa [#allocation4], 1 }
 0x292   :  { %398 = vsyncpa [#allocation7], 1 }
 0x293   :  { %399 = vsyncpa [#allocation10], 1 }
 0x294   :  { %400 = vsyncpa [#allocation5], 1 }
 0x295   :  { %401 = vsyncpa [#allocation13], 1 }

</bundles_post_ra>
